<compile_context>
chip_gen: v7x
topology: tpu7x:2x2x1
jax: 0.10.0
libtpu: 0.0.40
codegen_flags: <defaults>
</compile_context>

<pallas_src>
import jax
import jax.numpy as jnp
from jax.experimental import pallas as pl
from jax.experimental.pallas import tpu as pltpu


def _starrelu_kernel(scale_ref, bias_ref, x_ref, o_ref):
    s = scale_ref[0]                       # f32 scalar from SMEM
    b = bias_ref[0]
    x = x_ref[...]
    r = jnp.maximum(x, 0)                  # ReLU (stays in x dtype)
    # The f32 scalars promote the arithmetic to f32; cast back explicitly so
    # bf16 / narrower activations store correctly.
    o_ref[...] = (s * r * r + b).astype(o_ref.dtype)


_LANE_CANDIDATES = (8192, 4096, 2048, 1024, 512, 256, 128)
_TARGET_BLOCK_BYTES = 2 * 1024 * 1024      # ~2 MiB per block


def _pick_lane(n):
    for cand in _LANE_CANDIDATES:
        if n % cand == 0:
            return cand
    return 128                             # ragged fallback (needs padding)


def starrelu(x, scale, bias):
    """StarReLU: scale * relu(x)**2 + bias.  scale/bias are shape-(1,) arrays."""
    orig_shape = x.shape
    dtype = x.dtype
    n = x.size
    itemsize = jnp.dtype(dtype).itemsize
    sub_pack = 8 * max(1, 4 // itemsize)   # 8 f32 / 16 bf16 / 32 int8+fp8

    lane = _pick_lane(n)
    needs_pad = (n % lane) != 0
    rows = pl.cdiv(n, lane)

    if needs_pad:
        # Slow path only for sizes not divisible by 128 (extra HBM round trip).
        xf = jnp.pad(x.reshape(-1), (0, rows * lane - n)).reshape(rows, lane)
    else:
        xf = x.reshape(rows, lane)         # free reshape, no copy

    tile_rows = max(sub_pack, _TARGET_BLOCK_BYTES // (lane * itemsize))
    if rows <= tile_rows:
        tile_rows = rows                   # single block = full slab (allowed)
    else:
        tile_rows = (tile_rows // sub_pack) * sub_pack

    grid = (pl.cdiv(rows, tile_rows),)     # boundary block handled by Pallas

    scale = jnp.asarray(scale, jnp.float32).reshape(1)
    bias = jnp.asarray(bias, jnp.float32).reshape(1)

    out = pl.pallas_call(
        _starrelu_kernel,
        out_shape=jax.ShapeDtypeStruct((rows, lane), dtype),
        grid=grid,
        in_specs=[
            pl.BlockSpec(memory_space=pltpu.SMEM),               # scale (1,)
            pl.BlockSpec(memory_space=pltpu.SMEM),               # bias  (1,)
            pl.BlockSpec((tile_rows, lane), lambda i: (i, 0)),   # x block
        ],
        out_specs=pl.BlockSpec((tile_rows, lane), lambda i: (i, 0)),
        compiler_params=pltpu.CompilerParams(
            dimension_semantics=("parallel",),
        ),
        cost_estimate=pl.CostEstimate(
            flops=3 * n, transcendentals=0, bytes_accessed=2 * n * itemsize),
    )(scale, bias, xf)

    if needs_pad:
        return out.reshape(-1)[:n].reshape(orig_shape)
    return out.reshape(orig_shape)


if __name__ == "__main__":
    key = jax.random.PRNGKey(0)

    # Deterministic parameter init mirroring StarReLU.__init__ defaults:
    #   scale = scale_value * ones(1) = 1.0, bias = bias_value * ones(1) = 0.0
    scale = jnp.ones((1,), dtype=jnp.float32) * 1.0
    bias = jnp.ones((1,), dtype=jnp.float32) * 0.0

    # 1) f32 NCHW activation (fast path: element count divisible by 128)
    x = jax.random.normal(key, (2, 4, 16, 16), dtype=jnp.float32)
    out = jax.block_until_ready(starrelu(x, scale, bias))
    ref = scale[0] * jnp.maximum(x, 0.0) ** 2 + bias[0]
    assert out.shape == x.shape and out.dtype == x.dtype
    assert jnp.allclose(out, ref, atol=1e-6, rtol=1e-6)

    # 2) bf16 activation (halved HBM traffic; explicit downcast in-kernel)
    xb = jax.random.normal(jax.random.PRNGKey(1), (2, 4, 16, 16)).astype(jnp.bfloat16)
    outb = jax.block_until_ready(starrelu(xb, scale, bias))
    refb = (scale[0] * jnp.maximum(xb.astype(jnp.float32), 0.0) ** 2
            + bias[0]).astype(jnp.bfloat16)
    assert outb.shape == xb.shape and outb.dtype == xb.dtype
    assert jnp.allclose(outb.astype(jnp.float32), refb.astype(jnp.float32),
                        atol=1e-2, rtol=1e-2)

    # 3) ragged size (not a multiple of 128) exercises the padded slow path
    xr = jax.random.normal(jax.random.PRNGKey(2), (3, 5, 7, 9), dtype=jnp.float32)
    outr = jax.block_until_ready(starrelu(xr, scale, bias))
    refr = scale[0] * jnp.maximum(xr, 0.0) ** 2 + bias[0]
    assert outr.shape == xr.shape and outr.dtype == xr.dtype
    assert jnp.allclose(outr, refr, atol=1e-6, rtol=1e-6)

    print("KERNEL_OK")
</pallas_src>

<mosaic_0001>
module attributes {stable_mosaic.version = 11 : i64} {
  func.func @_starrelu_kernel(%arg0: i32, %arg1: memref<1xf32, #tpu.memory_space<smem>>, %arg2: memref<1xf32, #tpu.memory_space<smem>>, %arg3: memref<1x2048xf32, #tpu.memory_space<vmem>>, %arg4: memref<1x2048xf32, #tpu.memory_space<vmem>>) attributes {dimension_semantics = [#tpu.dimension_semantics<parallel>], iteration_bounds = array<i64: 1>, scalar_prefetch = 0 : i64, scratch_operands = 0 : i64, tpu.core_type = #tpu.core_type<tc>, window_params = [{transform_indices = @transform_0, window_bounds = array<i64: 1>}, {transform_indices = @transform_1, window_bounds = array<i64: 1>}, {transform_indices = @transform_2, window_bounds = array<i64: 1, 2048>}, {transform_indices = @transform_3, window_bounds = array<i64: 1, 2048>}]} {
    %c0 = arith.constant 0 : index
    %0 = memref.load %arg1[%c0] : memref<1xf32, #tpu.memory_space<smem>>
    %c0_0 = arith.constant 0 : index
    %1 = memref.load %arg2[%c0_0] : memref<1xf32, #tpu.memory_space<smem>>
    %c0_1 = arith.constant 0 : index
    %c0_2 = arith.constant 0 : index
    %2 = vector.load %arg3[%c0_1, %c0_2] : memref<1x2048xf32, #tpu.memory_space<vmem>>, vector<1x2048xf32>
    %cst = arith.constant 0.000000e+00 : f32
    %3 = vector.broadcast %cst : f32 to vector<1x2048xf32>
    %4 = arith.maximumf %2, %3 : vector<1x2048xf32>
    %5 = vector.broadcast %0 : f32 to vector<1x2048xf32>
    %6 = arith.mulf %5, %4 : vector<1x2048xf32>
    %7 = arith.mulf %6, %4 : vector<1x2048xf32>
    %8 = vector.broadcast %1 : f32 to vector<1x2048xf32>
    %9 = arith.addf %7, %8 : vector<1x2048xf32>
    %c0_3 = arith.constant 0 : index
    %c0_4 = arith.constant 0 : index
    %10 = vector.load %arg4[%c0_3, %c0_4] : memref<1x2048xf32, #tpu.memory_space<vmem>>, vector<1x2048xf32>
    tpu.vector_store %arg4[%c0_3, %c0_4], %9 {strides = array<i32>} : memref<1x2048xf32, #tpu.memory_space<vmem>>, vector<1x2048xf32>,
    return
  }
  func.func @transform_0(%arg0: i32) -> i32 {
    %c0_i32 = arith.constant 0 : i32
    %c0_i32_0 = arith.constant 0 : i32
    return %c0_i32 : i32
  }
  func.func @transform_1(%arg0: i32) -> i32 {
    %c0_i32 = arith.constant 0 : i32
    %c0_i32_0 = arith.constant 0 : i32
    return %c0_i32 : i32
  }
  func.func @transform_2(%arg0: i32) -> (i32, i32) {
    %c0_i32 = arith.constant 0 : i32
    %c0_i32_0 = arith.constant 0 : i32
    return %arg0, %c0_i32 : i32, i32
  }
  func.func @transform_3(%arg0: i32) -> (i32, i32) {
    %c0_i32 = arith.constant 0 : i32
    %c0_i32_0 = arith.constant 0 : i32
    return %arg0, %c0_i32 : i32, i32
  }
}

</mosaic_0001>

<bundles_post_ra>
// kernel: tpu_custom_call.1
= control target key start
LH: loop header
LB: loop body
LE: loop exit
PB: predicated region body
PF: predicated region fallthrough
CT: control target
= control target key end

     0   :  { %10 = vsyncpa [#allocation5], 0  ;;  %s162_s0 = inlined_call_operand.<no memory space> [shape: f32[1], index: 0, kind: input, shape index: {}]   ;;  %s163_s1 = inlined_call_operand.<no memory space> [shape: f32[1], index: 1, kind: input, shape index: {}]   ;;  %s164_s2 = inlined_call_operand.hbm [shape: f32[1,2048], index: 2, kind: input, shape index: {}]   ;;  %s165_s3 = inlined_call_operand.hbm [shape: f32[1,2048], index: 3, kind: output, shape index: {}]  }
   0x1   :  { %11 = vsyncpa [#allocation6], 0  ;;  %s110_s12 = smov [#allocation4]   ;;  %s62_s16 = scalar_lea.hbm %s164_s2, 256 }
   0x2   :  { %s22_s13 = sshll.u32 %s110_s12, 4  ;;  %p63_p0 = scmp.ne.s32.totalorder %s164_s2, %s62_s16  ;;  %s23_s13 = int_to_ptr.vmem [resolvable:$true] %s22_s13 }
   0x3   :  { %p66_p1 = scmp.lt.u32.totalorder %s62_s16, %s164_s2 }
   0x5   :  { %p68_p2 = pnand %p66_p1, %p63_p0 }
   0x7   :  { %71 = shalt.err (!%p68_p2)
}
   0x8   :  { %s72_s21 = scalar_lea.vmem %s23_s13, 256  ;;  %p77_p4 = scmp.lt.s32.totalorder %s23_s13, %s23_s13 }
   0x9   :  { %p73_p3 = scmp.ne.s32.totalorder %s23_s13, %s72_s21  ;;  %p78_p5 = scmp.lt.s32.totalorder %s72_s21, %s72_s21 }
   0xb   :  { %p79_p6 = por %p78_p5, %p77_p4 }
   0xd   :  { %p80_p7 = pnand %p79_p6, %p73_p3 }
   0xf   :  { %83 = shalt.err (!%p80_p7)
}
  0x10   :  { %25 = dma.hbm_to_vmem [thread:$0]  %s164_s2, 256, %s23_s13, [#allocation5]  }
  0x11   :  { %106 = dma.done.wait [#allocation5], 256  }
  0x12   :  { %107 = vsyncadd [#allocation5], 4294967040  ;;  %v31_v0 = vld [vmem:[#allocation4] sm:$0xff]  ;;  %v35_v1 = vstv %s162_s0  ;;  %v32_v2 = vld [vmem:[#allocation4 + $0x8] sm:$0xff]  ;;  %v40_v7 = vstv %s163_s1  ;;  %s111_s28 = smov [#allocation7]  }
  0x13   :  { %v33_v3 = vmax.f32 %v31_v0, 0.0  ;;  %v34_v4 = vmax.f32 %v32_v2, 0.0  ;;  %s51_s29 = sshll.u32 %s111_s28, 4  ;;  %s52_s29 = int_to_ptr.vmem [resolvable:$true] %s51_s29 }
  0x14   :  { %s84_s2 = scalar_lea.vmem %s52_s29, 256  ;;  %p89_p9 = scmp.lt.s32.totalorder %s52_s29, %s52_s29 }
  0x15   :  { %v36_v5 = vmul.f32 %v35_v1, %v33_v3  ;;  %v37_v6 = vmul.f32 %v35_v1, %v34_v4  ;;  %p85_p8 = scmp.ne.s32.totalorder %s52_s29, %s84_s2  ;;  %p90_p10 = scmp.lt.s32.totalorder %s84_s2, %s84_s2 }
  0x17   :  { %v38_v8 = vmul.f32 %v36_v5, %v33_v3  ;;  %v39_v9 = vmul.f32 %v37_v6, %v34_v4  ;;  %p91_p11 = por %p90_p10, %p89_p9 }
  0x19   :  { %v41_v10 = vadd.f32 %v40_v7, %v38_v8  ;;  %v42_v11 = vadd.f32 %v40_v7, %v39_v9  ;;  %p92_p12 = pnand %p91_p11, %p85_p8 }
  0x1b   :  { %43 = vst [vmem:[#allocation7] sm:$0xff] %v41_v10  ;;  %44 = vst [vmem:[#allocation7 + $0x8] sm:$0xff] %v42_v11 }
  0x1c   :  { %95 = shalt.err (!%p92_p12)
}
  0x1d   :  { %s96_s1 = scalar_lea.hbm %s165_s3, 256 }
  0x1e   :  { %p97_p13 = scmp.ne.s32.totalorder %s165_s3, %s96_s1  ;;  %p100_p0 = scmp.lt.u32.totalorder %s96_s1, %s165_s3 }
  0x20   :  { %p102_p1 = pnand %p100_p0, %p97_p13 }
  0x22   :  { %105 = shalt.err (!%p102_p1)
}
  0x23   :  { %54 = dma.vmem_to_hbm [thread:$0]  %s52_s29, 256, %s165_s3, [#allocation6]  }
  0x24   :  { %108 = dma.done.wait [#allocation6], 256  }
  0x25   :  { %109 = vsyncadd [#allocation6], 4294967040 }
  0x26   :  { %58 = vsyncpa [#allocation5], 1 }
  0x27   :  { %59 = vsyncpa [#allocation6], 1 }

</bundles_post_ra>
